<compile_context>
chip_gen: v7x
topology: tpu7x:2x2x1
jax: 0.10.0
libtpu: 0.0.40
codegen_flags: <defaults>
</compile_context>

<pallas_src>
import functools

import jax
import jax.numpy as jnp
from jax.experimental import pallas as pl
from jax.experimental.pallas import tpu as pltpu


def _vmem_capacity_bytes():
    """Physical VMEM of the current TPU generation (fallback: v7x 64 MiB)."""
    try:
        info = pltpu.get_tpu_info()
        cap = getattr(info, "vmem_capacity_bytes", None)
        if cap:
            return int(cap)
    except Exception:
        pass
    return 64 * 1024 * 1024


def _pick_tiling(n_rows, n_classes, vmem_limit_bytes):
    """Pick (block_rows, padded_rows): the largest row block that fits VMEM."""
    # Per-row footprint: double-buffered f32 logits block (2*4*C) plus roughly
    # four full-width f32/i32 in-kernel temporaries (z, e, iota, masked copies),
    # plus a little for the target / per-row scalar columns.
    bytes_per_row = 4 * n_classes * (2 + 4) + 64
    budget = max(vmem_limit_bytes // 2, bytes_per_row)   # ~50% headroom
    br = budget // bytes_per_row
    br = max(8, min(int(br), 1024))     # ~512-1024 rows amortise per-step overhead
    br = (br // 8) * 8
    padded_min = ((n_rows + 7) // 8) * 8
    if br >= padded_min:
        return padded_min, padded_min
    nb = -(-n_rows // br)                          # number of row blocks
    br = ((-(-n_rows // nb) + 7) // 8) * 8         # re-balance, multiple of 8
    return br, nb * br


def _pow(x, gamma):
    """x ** gamma without the generic pow lowering when gamma is a small int."""
    g = float(gamma)
    if g.is_integer() and 0.0 <= g <= 8.0:
        n = int(g)
        if n == 0:
            return jnp.ones_like(x)
        r = x
        for _ in range(n - 1):
            r = r * x
        return r
    # base = 1 - pt + p_second > 0 mathematically; guard against rounding.
    return jnp.exp(g * jnp.log(jnp.maximum(x, jnp.finfo(x.dtype).tiny)))


def _row_dual_focal(logits, tgt, gamma):
    """logits: (TN, C) f32, tgt: (TN, 1) i32 -> per-row loss (TN, 1) f32."""
    C = logits.shape[-1]
    # Shift by the row max once; everything else reuses z / e / s.
    m = jnp.max(logits, axis=-1, keepdims=True)
    z = logits - m                               # row max of z is exactly 0
    e = jnp.exp(z)                               # unnormalised probs, max(e) == 1
    s = jnp.sum(e, axis=-1, keepdims=True)
    lse = jnp.log(s)

    col = jax.lax.broadcasted_iota(jnp.int32, logits.shape, 1)
    onehot = col == tgt                          # gather via one-hot masks
    z_t = jnp.sum(jnp.where(onehot, z, 0.0), axis=-1, keepdims=True)
    e_t = jnp.sum(jnp.where(onehot, e, 0.0), axis=-1, keepdims=True)
    logpt = z_t - lse                            # log_softmax gathered at target

    # PyTorch descending-sort semantics: sorted_p[:, 1] is the max with exactly
    # one occurrence of the maximum removed.  max(e) == 1 and its first
    # occurrence is the smallest index where z == 0, so no extra reduction on
    # the normalised probabilities is needed.  NOTE: requires C >= 2 (the
    # PyTorch reference also indexes sorted_p[:, 1]).
    first_max_idx = jnp.min(jnp.where(z == 0.0, col, C), axis=-1, keepdims=True)
    e_second = jnp.max(jnp.where(col == first_max_idx, -jnp.inf, e),
                       axis=-1, keepdims=True)

    inv_s = 1.0 / s                              # per-row scalar normalisation only
    pt = e_t * inv_s
    target_is_top = e_t == 1.0                   # pt ties the max probability
    p_second = jnp.where(target_is_top, e_second, 1.0) * inv_s
    weight = _pow(1.0 - pt + p_second, gamma)
    return -weight * logpt                       # (TN, 1)


def _kernel_partial(logits_ref, tgt_ref, psum_ref, *, gamma, n_valid, block_rows):
    """Per-block partial sum of the loss (padded rows masked out)."""
    loss = _row_dual_focal(logits_ref[...].astype(jnp.float32), tgt_ref[...], gamma)
    if n_valid % block_rows != 0:                # static: padding exists
        i = pl.program_id(0)
        row = i * block_rows + jax.lax.broadcasted_iota(jnp.int32, loss.shape, 0)
        loss = jnp.where(row < n_valid, loss, 0.0)
    psum_ref[...] = jnp.sum(loss, axis=0, keepdims=True)


def _kernel_none(logits_ref, tgt_ref, out_ref, *, gamma):
    out_ref[...] = _row_dual_focal(
        logits_ref[...].astype(jnp.float32), tgt_ref[...], gamma)


def dual_focal_loss(logits, targets, gamma=2.0, reduction="mean", block_rows=None):
    """Pallas TPU implementation of DualFocalLoss.forward for 2-D logits."""
    N, C = logits.shape
    # TODO(synk): for vocab-scale C, add a class-chunk grid axis with online
    # running max / sum / top-2 accumulation instead of a single (rows, C) block.

    vmem_cap = _vmem_capacity_bytes()            # per-generation (v5e/v6e/v7x)
    vmem_limit = min(int(vmem_cap * 0.7), 100 * 1024 * 1024)

    if block_rows is None:
        block_rows, padded_n = _pick_tiling(N, C, vmem_limit)
    else:
        block_rows = max(8, (int(block_rows) // 8) * 8)
        padded_n = -(-N // block_rows) * block_rows

    tgt2 = targets.astype(jnp.int32).reshape(N, 1)
    pad = padded_n - N
    if pad:
        logits_p = jnp.pad(logits, ((0, pad), (0, 0)))
        tgt_p = jnp.pad(tgt2, ((0, pad), (0, 0)))
    else:
        logits_p, tgt_p = logits, tgt2

    num_blocks = padded_n // block_rows
    in_specs = [
        pl.BlockSpec((block_rows, C), lambda i: (i, 0)),
        pl.BlockSpec((block_rows, 1), lambda i: (i, 0)),
    ]
    cparams = pltpu.CompilerParams(dimension_semantics=("parallel",),
                                   vmem_limit_bytes=vmem_limit)

    if reduction in ("mean", "sum"):
        kern = functools.partial(_kernel_partial, gamma=gamma,
                                 n_valid=N, block_rows=block_rows)
        psum = pl.pallas_call(
            kern,
            out_shape=jax.ShapeDtypeStruct((num_blocks, 1), jnp.float32),
            grid_spec=pltpu.PrefetchScalarGridSpec(
                num_scalar_prefetch=0,
                grid=(num_blocks,),
                in_specs=in_specs,
                out_specs=pl.BlockSpec((1, 1), lambda i: (i, 0)),
            ),
            compiler_params=cparams,
        )(logits_p, tgt_p)
        total = jnp.sum(psum)
        if reduction == "mean":
            return total / jnp.float32(N)
        return total

    # reduction == 'none'
    out = pl.pallas_call(
        functools.partial(_kernel_none, gamma=gamma),
        out_shape=jax.ShapeDtypeStruct((padded_n, 1), jnp.float32),
        grid_spec=pltpu.PrefetchScalarGridSpec(
            num_scalar_prefetch=0,
            grid=(num_blocks,),
            in_specs=in_specs,
            out_specs=pl.BlockSpec((block_rows, 1), lambda i: (i, 0)),
        ),
        compiler_params=cparams,
    )(logits_p, tgt_p)
    return out[:N, 0]


def _reference(logits, targets, gamma=2.0, reduction="mean"):
    logp = jax.nn.log_softmax(logits, axis=1)
    p = jnp.exp(logp)
    pt = jnp.take_along_axis(p, targets[:, None], axis=1)[:, 0]
    logpt = jnp.take_along_axis(logp, targets[:, None], axis=1)[:, 0]
    sorted_p = jnp.sort(p, axis=1)[:, ::-1]
    p_second = jnp.where(sorted_p[:, 0] == pt, sorted_p[:, 1], sorted_p[:, 0])
    weight = (1.0 - pt + p_second) ** gamma
    loss = -weight * logpt
    if reduction == "mean":
        return loss.mean()
    if reduction == "sum":
        return loss.sum()
    return loss


if __name__ == "__main__":
    key = jax.random.PRNGKey(0)
    k1, k2, k3, k4 = jax.random.split(key, 4)

    # default module config: gamma=2.0, reduction='mean'
    N, C = 16, 16
    logits = jax.random.normal(k1, (N, C), dtype=jnp.float32)
    targets = jax.random.randint(k2, (N,), 0, C, dtype=jnp.int32)

    out = jax.block_until_ready(
        dual_focal_loss(logits, targets, gamma=2.0, reduction="mean"))
    ref = _reference(logits, targets, gamma=2.0, reduction="mean")
    assert jnp.allclose(out, ref, rtol=1e-5, atol=1e-5), (out, ref)

    # also exercise 'none' and 'sum' paths
    out_none = jax.block_until_ready(
        dual_focal_loss(logits, targets, gamma=2.0, reduction="none"))
    ref_none = _reference(logits, targets, gamma=2.0, reduction="none")
    assert jnp.allclose(out_none, ref_none, rtol=1e-5, atol=1e-5)

    out_sum = jax.block_until_ready(
        dual_focal_loss(logits, targets, gamma=2.0, reduction="sum"))
    ref_sum = _reference(logits, targets, gamma=2.0, reduction="sum")
    assert jnp.allclose(out_sum, ref_sum, rtol=1e-5, atol=1e-5)

    # pad-and-mask + multi-block path (N not divisible by the block, >1 block)
    N2, C2 = 40, 16
    logits2 = jax.random.normal(k3, (N2, C2), dtype=jnp.float32)
    targets2 = jax.random.randint(k4, (N2,), 0, C2, dtype=jnp.int32)
    out2 = jax.block_until_ready(
        dual_focal_loss(logits2, targets2, gamma=2.0, reduction="mean",
                        block_rows=16))
    ref2 = _reference(logits2, targets2, gamma=2.0, reduction="mean")
    assert jnp.allclose(out2, ref2, rtol=1e-5, atol=1e-5), (out2, ref2)

    out2_none = jax.block_until_ready(
        dual_focal_loss(logits2, targets2, gamma=2.0, reduction="none",
                        block_rows=16))
    ref2_none = _reference(logits2, targets2, gamma=2.0, reduction="none")
    assert jnp.allclose(out2_none, ref2_none, rtol=1e-5, atol=1e-5)

    print("KERNEL_OK")
</pallas_src>

<mosaic_0001>
module attributes {stable_mosaic.version = 11 : i64} {
  func.func @_kernel_partial(%arg0: i32, %arg1: memref<16x16xf32, #tpu.memory_space<vmem>>, %arg2: memref<16x1xi32, #tpu.memory_space<vmem>>, %arg3: memref<1x1xf32, #tpu.memory_space<vmem>>) attributes {dimension_semantics = [#tpu.dimension_semantics<parallel>], iteration_bounds = array<i64: 1>, scalar_prefetch = 0 : i64, scratch_operands = 0 : i64, tpu.core_type = #tpu.core_type<tc>, window_params = [{transform_indices = @transform_0, window_bounds = array<i64: 16, 16>}, {transform_indices = @transform_1, window_bounds = array<i64: 16, 1>}, {transform_indices = @transform_2, window_bounds = array<i64: 1, 1>}]} {
    %c0 = arith.constant 0 : index
    %c0_0 = arith.constant 0 : index
    %0 = vector.load %arg1[%c0, %c0_0] : memref<16x16xf32, #tpu.memory_space<vmem>>, vector<16x16xf32>
    %c0_1 = arith.constant 0 : index
    %c0_2 = arith.constant 0 : index
    %1 = vector.load %arg2[%c0_1, %c0_2] : memref<16x1xi32, #tpu.memory_space<vmem>>, vector<16x1xi32>
    %cst = arith.constant dense<0xFF800000> : vector<16xf32>
    %2 = vector.multi_reduction <maximumf>, %0, %cst [1] : vector<16x16xf32> to vector<16xf32>
    %3 = vector.shape_cast %2 : vector<16xf32> to vector<16x1xf32>
    %4 = vector.broadcast %3 : vector<16x1xf32> to vector<16x16xf32>
    %5 = arith.subf %0, %4 : vector<16x16xf32>
    %6 = math.exp %5 : vector<16x16xf32>
    %cst_3 = arith.constant dense<0.000000e+00> : vector<16xf32>
    %7 = vector.multi_reduction <add>, %6, %cst_3 [1] : vector<16x16xf32> to vector<16xf32>
    %8 = vector.shape_cast %7 : vector<16xf32> to vector<16x1xf32>
    %9 = math.log %8 : vector<16x1xf32>
    %10 = tpu.iota {dimensions = array<i32: 1>} : vector<16x16xi32>
    %11 = vector.broadcast %1 : vector<16x1xi32> to vector<16x16xi32>
    %12 = arith.cmpi eq, %10, %11 : vector<16x16xi32>
    %cst_4 = arith.constant 0.000000e+00 : f32
    %13 = vector.broadcast %cst_4 : f32 to vector<16x16xf32>
    %14 = arith.select %12, %5, %13 : vector<16x16xi1>, vector<16x16xf32>
    %cst_5 = arith.constant dense<0.000000e+00> : vector<16xf32>
    %15 = vector.multi_reduction <add>, %14, %cst_5 [1] : vector<16x16xf32> to vector<16xf32>
    %16 = vector.shape_cast %15 : vector<16xf32> to vector<16x1xf32>
    %cst_6 = arith.constant 0.000000e+00 : f32
    %17 = vector.broadcast %cst_6 : f32 to vector<16x16xf32>
    %18 = arith.select %12, %6, %17 : vector<16x16xi1>, vector<16x16xf32>
    %cst_7 = arith.constant dense<0.000000e+00> : vector<16xf32>
    %19 = vector.multi_reduction <add>, %18, %cst_7 [1] : vector<16x16xf32> to vector<16xf32>
    %20 = vector.shape_cast %19 : vector<16xf32> to vector<16x1xf32>
    %21 = arith.subf %16, %9 : vector<16x1xf32>
    %cst_8 = arith.constant 0.000000e+00 : f32
    %22 = vector.broadcast %cst_8 : f32 to vector<16x16xf32>
    %23 = arith.cmpf oeq, %5, %22 : vector<16x16xf32>
    %c16_i32 = arith.constant 16 : i32
    %24 = vector.broadcast %c16_i32 : i32 to vector<16x16xi32>
    %25 = arith.select %23, %10, %24 : vector<16x16xi1>, vector<16x16xi32>
    %cst_9 = arith.constant dense<2147483647> : vector<16xi32>
    %26 = vector.multi_reduction <minsi>, %25, %cst_9 [1] : vector<16x16xi32> to vector<16xi32>
    %27 = vector.shape_cast %26 : vector<16xi32> to vector<16x1xi32>
    %28 = vector.broadcast %27 : vector<16x1xi32> to vector<16x16xi32>
    %29 = arith.cmpi eq, %10, %28 : vector<16x16xi32>
    %cst_10 = arith.constant 0xFF800000 : f32
    %30 = vector.broadcast %cst_10 : f32 to vector<16x16xf32>
    %31 = arith.select %29, %30, %6 : vector<16x16xi1>, vector<16x16xf32>
    %cst_11 = arith.constant dense<0xFF800000> : vector<16xf32>
    %32 = vector.multi_reduction <maximumf>, %31, %cst_11 [1] : vector<16x16xf32> to vector<16xf32>
    %33 = vector.shape_cast %32 : vector<16xf32> to vector<16x1xf32>
    %cst_12 = arith.constant 1.000000e+00 : f32
    %34 = vector.broadcast %cst_12 : f32 to vector<16x1xf32>
    %35 = arith.divf %34, %8 : vector<16x1xf32>
    %36 = arith.mulf %20, %35 : vector<16x1xf32>
    %cst_13 = arith.constant 1.000000e+00 : f32
    %37 = vector.broadcast %cst_13 : f32 to vector<16x1xf32>
    %38 = arith.cmpf oeq, %20, %37 : vector<16x1xf32>
    %cst_14 = arith.constant 1.000000e+00 : f32
    %39 = vector.broadcast %cst_14 : f32 to vector<16x1xf32>
    %40 = arith.select %38, %33, %39 : vector<16x1xi1>, vector<16x1xf32>
    %41 = arith.mulf %40, %35 : vector<16x1xf32>
    %cst_15 = arith.constant 1.000000e+00 : f32
    %42 = vector.broadcast %cst_15 : f32 to vector<16x1xf32>
    %43 = arith.subf %42, %36 : vector<16x1xf32>
    %44 = arith.addf %43, %41 : vector<16x1xf32>
    %45 = arith.mulf %44, %44 : vector<16x1xf32>
    %cst_16 = arith.constant 0.000000e+00 : f32
    %46 = vector.broadcast %cst_16 : f32 to vector<16x1xf32>
    %47 = arith.subf %46, %45 : vector<16x1xf32>
    %48 = arith.mulf %47, %21 : vector<16x1xf32>
    %cst_17 = arith.constant dense<0.000000e+00> : vector<1xf32>
    %49 = vector.multi_reduction <add>, %48, %cst_17 [0] : vector<16x1xf32> to vector<1xf32>
    %50 = vector.shape_cast %49 : vector<1xf32> to vector<1x1xf32>
    %c0_18 = arith.constant 0 : index
    %c0_19 = arith.constant 0 : index
    %51 = vector.load %arg3[%c0_18, %c0_19] : memref<1x1xf32, #tpu.memory_space<vmem>>, vector<1x1xf32>
    tpu.vector_store %arg3[%c0_18, %c0_19], %50 {strides = array<i32>} : memref<1x1xf32, #tpu.memory_space<vmem>>, vector<1x1xf32>,
    return
  }
  func.func @transform_0(%arg0: i32) -> (i32, i32) {
    %c0_i32 = arith.constant 0 : i32
    %c0_i32_0 = arith.constant 0 : i32
    return %arg0, %c0_i32 : i32, i32
  }
  func.func @transform_1(%arg0: i32) -> (i32, i32) {
    %c0_i32 = arith.constant 0 : i32
    %c0_i32_0 = arith.constant 0 : i32
    return %arg0, %c0_i32 : i32, i32
  }
  func.func @transform_2(%arg0: i32) -> (i32, i32) {
    %c0_i32 = arith.constant 0 : i32
    %c0_i32_0 = arith.constant 0 : i32
    return %arg0, %c0_i32 : i32, i32
  }
}

</mosaic_0001>

<bundles_post_ra>
// kernel: tpu_custom_call.1
= control target key start
LH: loop header
LB: loop body
LE: loop exit
PB: predicated region body
PF: predicated region fallthrough
CT: control target
= control target key end

     0   :  { %vm16_vm0 = vcmask 130048   ;;  %s275_s0 = inlined_call_operand.vmem [shape: f32[16,16], index: 0, kind: input, shape index: {}]   ;;  %s276_s1 = inlined_call_operand.vmem [shape: s32[16,1], index: 1, kind: input, shape index: {}]   ;;  %s277_s2 = inlined_call_operand.hbm [shape: f32[1,1], index: 2, kind: output, shape index: {}]  }
   0x1   :  { %v12_v0 = vld [vmem:[%s275_s0] sm:$0xff]  ;;  %v13_v1 = vld [vmem:[%s275_s0 + $0x8] sm:$0xff] }
   0x2   :  { %7 = vsyncpa [#allocation3], 0  ;;  %v17_v2 = vsel %vm16_vm0, %v12_v0, -inf  ;;  %v20_v3 = vsel %vm16_vm0, %v13_v1, -inf  ;;  %v39_v4 = vlaneseq  ;;  %v196_v18 = vmov 0   ;;  %v15_v27 = vld [vmem:[%s276_s1 + $0x8] sm:$0xff] }
   0x3   :  { %18 = vmax.xlane.f32.xlu0 %v17_v2  ;;  %159 = vset.pattern.permute.xlu1 %v196_v18  ;;  %v14_v28 = vld [vmem:[%s276_s1] sm:$0xff]  ;;  %s197_s1 = smov [#allocation2]   ;;  %vm140_vm11 = vcmask 0  }
   0x4   :  { %v221_v6 = vand.u32 127, %v39_v4  ;;  %158 = vset.pattern.permute.xlu0 %v196_v18  ;;  %s148_s16 = sshll.u32 %s197_s1, 4  ;;  %s149_s16 = int_to_ptr.vmem [resolvable:$true] %s148_s16 }
   0x5   :  { %s172_s17 = scalar_lea.vmem %s149_s16, 16  ;;  %s176_s18 = scalar_lea.vmem %s149_s16, 32 }
   0x6   :  { %p173_p0 = scmp.ne.s32.totalorder %s149_s16, %s172_s17  ;;  %p177_p1 = scmp.lt.s32.totalorder %s149_s16, %s149_s16 }
   0x7   :  { %21 = vmax.xlane.f32.xlu0 %v20_v3  ;;  %p178_p2 = scmp.lt.s32.totalorder %s176_s18, %s172_s17 }
   0x9   :  { %p179_p3 = por %p178_p2, %p177_p1 }
   0xb   :  { %p180_p4 = pnand %p179_p3, %p173_p0 }
  0x90   :  { %v19_v5 = vpop.xlane.xlu0 %18 }
  0x91   :  { %v223_v7 = vsub.f32 %v12_v0, %v19_v5 }
  0x93   :  { %vm67_vm1 = vcmp.eq.f32.partialorder %v223_v7, 0.0  ;;  %v25_v30 = vmul.f32 1.442695, %v223_v7 }
  0x94   :  { %v22_v8 = vpop.xlane.xlu0 %21  ;;  %v69_v9 = vsel %vm67_vm1, %v221_v6, 16 }
  0x95   :  { %v227_v10 = vsub.f32 %v13_v1, %v22_v8  ;;  %v71_v11 = vsel %vm16_vm0, %v69_v9, 2147483647 }
  0x96   :  { %v73_v12 = vshra.s32 %v71_v11, 16  ;;  %v72_v19 = vand.u32 65535, %v71_v11 }
  0x97   :  { %vm68_vm2 = vcmp.eq.f32.partialorder %v227_v10, 0.0  ;;  %v27_v29 = vmul.f32 1.442695, %v227_v10 }
  0x98   :  { %v75_v13 = vcvt.s32.f32 %v73_v12  ;;  %v70_v14 = vsel %vm68_vm2, %v221_v6, 16  ;;  %v74_v21 = vcvt.s32.f32 %v72_v19 }
  0x99   :  { %v86_v15 = vsel %vm16_vm0, %v70_v14, 2147483647  ;;  %160 = vpow2.f32 %v27_v29 }
  0x9a   :  { %76 = vmin.xlane.f32.xlu1 %v75_v13  ;;  %v88_v16 = vshra.s32 %v86_v15, 16  ;;  %v87_v22 = vand.u32 65535, %v86_v15  ;;  %162 = vpow2.f32 %v25_v30 }
  0x9c   :  { %v90_v17 = vcvt.s32.f32 %v88_v16  ;;  %v89_v25 = vcvt.s32.f32 %v87_v22 }
  0x9e   :  { %91 = vmin.xlane.f32.xlu1 %v90_v17 }
  0xa3   :  { %v161_v31 = vpop.eup %160 }
  0xa4   :  { %v32_v32 = vsel %vm16_vm0, %v161_v31, 0.0  ;;  %v163_v33 = vpop.eup %162 }
  0xa5   :  { %v29_v34 = vsel %vm16_vm0, %v163_v33, 0.0 }
 0x127   :  { %v77_v20 = vpop.xlane.xlu1 %76 }
 0x128   :  { %vm78_vm3 = vcmp.eq.f32.partialorder %v75_v13, %v77_v20  ;;  %v83_v36 = vcvt.f32.s32 %v77_v20 }
 0x129   :  { %v79_v23 = vsel %vm78_vm3, %v74_v21, inf }
 0x12a   :  { %80 = vmin.xlane.f32.xlu0 %v79_v23  ;;  %v84_v39 = vshll.u32 %v83_v36, 16 }
 0x12b   :  { %v92_v24 = vpop.xlane.xlu1 %91 }
 0x12c   :  { %vm93_vm4 = vcmp.eq.f32.partialorder %v90_v17, %v92_v24  ;;  %v98_v40 = vcvt.f32.s32 %v92_v24 }
 0x12d   :  { %v94_v26 = vsel %vm93_vm4, %v89_v25, inf }
 0x12e   :  { %95 = vmin.xlane.f32.xlu1 %v94_v26  ;;  %v99_v46 = vshll.u32 %v98_v40, 16 }
 0x13f   :  { %45 = vperm.xlu1 %159, %v15_v27  }
 0x140   :  { %42 = vperm.xlu0 %158, %v14_v28  }
 0x15f   :  { %33 = vadd.xlane.f32.xlu0 %v32_v32 }
 0x163   :  { %30 = vadd.xlane.f32.xlu1 %v29_v34 }
 0x1b7   :  { %v81_v35 = vpop.xlane.xlu0 %80 }
 0x1b8   :  { %v82_v38 = vcvt.f32.s32 %v81_v35 }
 0x1ba   :  { %v85_v43 = vadd.s32 %v84_v39, %v82_v38 }
 0x1bb   :  { %v96_v37 = vpop.xlane.xlu1 %95 }
 0x1bc   :  { %v97_v44 = vcvt.f32.s32 %v96_v37  ;;  %vm101_vm7 = vcmp.eq.s32.totalorder %v221_v6, %v85_v43 }
 0x1bd   :  { %v103_v51 = vsel %vm101_vm7, -inf, %v163_v33 }
 0x1be   :  { %v100_v49 = vadd.s32 %v99_v46, %v97_v44  ;;  %v105_v52 = vsel %vm16_vm0, %v103_v51, -inf }
 0x1bf   :  { %v46_v41 = vpop.permute.xlu1 %45  ;;  %v43_v42 = vpop.permute.xlu0 %42 }
 0x1c0   :  { %vm48_vm5 = vcmp.eq.s32.totalorder %v221_v6, %v46_v41  ;;  %vm47_vm6 = vcmp.eq.s32.totalorder %v221_v6, %v43_v42  ;;  %vm102_vm8 = vcmp.eq.s32.totalorder %v221_v6, %v100_v49 }
 0x1c1   :  { %v57_v45 = vsel %vm47_vm6, %v163_v33, 0.0  ;;  %v58_v48 = vsel %vm48_vm5, %v161_v31, 0.0  ;;  %v104_v53 = vsel %vm102_vm8, -inf, %v161_v31  ;;  %v49_v55 = vsel %vm47_vm6, %v223_v7, 0.0 }
 0x1c2   :  { %v59_v47 = vsel %vm16_vm0, %v57_v45, 0.0  ;;  %v62_v50 = vsel %vm16_vm0, %v58_v48, 0.0  ;;  %v108_v54 = vsel %vm16_vm0, %v104_v53, -inf  ;;  %v51_v56 = vsel %vm16_vm0, %v49_v55, 0.0 }
 0x1c3   :  { %60 = vadd.xlane.f32.xlu1 %v59_v47  ;;  %v50_v57 = vsel %vm48_vm5, %v227_v10, 0.0 }
 0x1c4   :  { %v54_v58 = vsel %vm16_vm0, %v50_v57, 0.0 }
 0x1c7   :  { %63 = vadd.xlane.f32.xlu1 %v62_v50 }
 0x1cb   :  { %106 = vmax.xlane.f32.xlu1 %v105_v52 }
 0x1cf   :  { %109 = vmax.xlane.f32.xlu1 %v108_v54 }
 0x1d3   :  { %52 = vadd.xlane.f32.xlu1 %v51_v56 }
 0x1d7   :  { %55 = vadd.xlane.f32.xlu1 %v54_v58 }
 0x1ec   :  { %v34_v60 = vpop.xlane.xlu0 %33 }
 0x1f0   :  { %v31_v59 = vpop.xlane.xlu1 %30 }
 0x1f1   :  { %164 = vrcp.f32 %v31_v59 }
 0x1f2   :  { %166 = vrcp.f32 %v34_v60 }
 0x1f3   :  { %168 = vlog2.f32 %v31_v59 }
 0x1f4   :  { %170 = vlog2.f32 %v34_v60 }
 0x1fb   :  { %v165_v63 = vpop.eup %164 }
 0x1fc   :  { %v167_v2 = vpop.eup %166 }
 0x1fd   :  { %v169_v10 = vpop.eup %168 }
 0x1fe   :  { %v171_v14 = vpop.eup %170  ;;  %v36_v17 = vmul.f32 0.6931472, %v169_v10 }
 0x1ff   :  { %v38_v21 = vmul.f32 0.6931472, %v171_v14 }
 0x250   :  { %v61_v61 = vpop.xlane.xlu1 %60 }
 0x251   :  { %v115_v0 = vmul.f32 %v165_v63, %v61_v61  ;;  %vm117_vm9 = vcmp.eq.f32.partialorder %v61_v61, 1.0 }
 0x253   :  { %v123_v4 = vsub.f32 1.0, %v115_v0 }
 0x254   :  { %v64_v62 = vpop.xlane.xlu1 %63 }
 0x255   :  { %v116_v5 = vmul.f32 %v167_v2, %v64_v62  ;;  %vm118_vm10 = vcmp.eq.f32.partialorder %v64_v62, 1.0 }
 0x257   :  { %v124_v11 = vsub.f32 1.0, %v116_v5 }
 0x258   :  { %v107_v1 = vpop.xlane.xlu1 %106 }
 0x259   :  { %v119_v3 = vsel %vm117_vm9, %v107_v1, 1.0 }
 0x25a   :  { %v121_v6 = vmul.f32 %v165_v63, %v119_v3 }
 0x25c   :  { %v125_v7 = vadd.f32 %v123_v4, %v121_v6  ;;  %v110_v8 = vpop.xlane.xlu1 %109 }
 0x25d   :  { %v120_v9 = vsel %vm118_vm10, %v110_v8, 1.0 }
 0x25e   :  { %v122_v12 = vmul.f32 %v167_v2, %v120_v9  ;;  %v127_v13 = vmul.f32 %v125_v7, %v125_v7 }
 0x260   :  { %v126_v15 = vadd.f32 %v124_v11, %v122_v12  ;;  %v53_v16 = vpop.xlane.xlu1 %52  ;;  %v129_v19 = vsub.f32 0.0, %v127_v13 }
 0x261   :  { %v65_v20 = vsub.f32 %v53_v16, %v36_v17 }
 0x262   :  { %v128_v18 = vmul.f32 %v126_v15, %v126_v15 }
 0x263   :  { %v131_v25 = vmul.f32 %v129_v19, %v65_v20 }
 0x264   :  { %v56_v22 = vpop.xlane.xlu1 %55  ;;  %v130_v23 = vsub.f32 0.0, %v128_v18 }
 0x265   :  { %v66_v24 = vsub.f32 %v56_v22, %v38_v21 }
 0x267   :  { %v132_v26 = vmul.f32 %v130_v23, %v66_v24 }
 0x269   :  { %v133_v27 = vadd.f32 %v132_v26, %v131_v25 }
 0x26b   :  { %v134_v28 = vrot.slane %v133_v27, 4 }
 0x26d   :  { %v135_v29 = vadd.f32 %v134_v28, %v133_v27 }
 0x26f   :  { %v136_v30 = vrot.slane %v135_v29, 2 }
 0x271   :  { %v137_v31 = vadd.f32 %v136_v30, %v135_v29 }
 0x273   :  { %v138_v32 = vrot.slane %v137_v31, 1 }
 0x275   :  { %v139_v33 = vadd.f32 %v138_v32, %v137_v31 }
 0x277   :  { %141 = vst.msk [vmem:[#allocation2] sm:$0x1] %vm140_vm11, %v139_v33 }
 0x278   :  { %183 = shalt.err (!%p180_p4)
}
 0x279   :  { %s184_s21 = scalar_lea.hbm %s277_s2, 16 }
 0x27a   :  { %p185_p5 = scmp.ne.s32.totalorder %s277_s2, %s184_s21  ;;  %p188_p6 = scmp.lt.u32.totalorder %s184_s21, %s277_s2 }
 0x27c   :  { %p190_p7 = pnand %p188_p6, %p185_p5 }
 0x27e   :  { %193 = shalt.err (!%p190_p7)
}
 0x27f   :  { %151 = dma.vmem_to_hbm [thread:$0]  %s149_s16, 16, %s277_s2, [#allocation3]  }
 0x280   :  { %194 = dma.done.wait [#allocation3], 16  }
 0x281   :  { %195 = vsyncadd [#allocation3], 4294967280 }
 0x282   :  { %155 = vsyncpa [#allocation3], 1 }

</bundles_post_ra>
